<compile_context>
chip_gen: v6e
topology: v6e:2x2x1
jax: 0.10.0
libtpu: 0.0.40
codegen_flags: <defaults>
</compile_context>

<pallas_src>
import functools

import jax
import jax.numpy as jnp
from jax.experimental import pallas as pl
from jax.experimental.pallas import tpu as pltpu


_LANE = 128
_SUBLANE = 8


def _round_up(x: int, m: int) -> int:
    return ((x + m - 1) // m) * m


def _cdiv(a: int, b: int) -> int:
    return (a + b - 1) // b


def _mcc_kernel(logits_ref, margin_ref, diag_ref, *,
                inv_temperature: float, batch_size: int,
                tiles_per_split: int):
    i = pl.program_id(0)      # core-split index ("parallel")
    j = pl.program_id(1)      # batch-tile index within the split ("arbitrary")

    @pl.when(j == 0)
    def _init():
        margin_ref[...] = jnp.zeros_like(margin_ref)
        diag_ref[...] = jnp.zeros_like(diag_ref)

    x = logits_ref[...].astype(jnp.float32)                 # (TB, C)
    tb, c = x.shape

    # Global (unclamped) tile index.  The in_spec clamps the DMA so a fully
    # out-of-range tile re-reads the last real tile; its rows are masked here.
    lin = i * tiles_per_split + j
    row_ids = lin * tb + jax.lax.broadcasted_iota(jnp.int32, (tb, 1), 0)
    row_valid = row_ids < batch_size                         # (TB, 1) bool

    # Mask invalid rows *before* exp so garbage data in a partial tile cannot
    # produce Inf (and 0 * Inf = NaN) in the accumulators.
    x = jnp.where(row_valid, x, 0.0)

    # softmax(logits / T), reciprocal-multiply form.
    x = x * jnp.float32(inv_temperature)
    xs = x - jnp.max(x, axis=1, keepdims=True)
    ex = jnp.exp(xs)
    den = jnp.sum(ex, axis=1, keepdims=True)
    p = ex * pl.reciprocal(den, approx=False)                # (TB, C)

    # Entropy via logsumexp identity: H = log(sum exp(xs)) - sum(p * xs).
    # (One log per row; drops tllib's +1e-5 eps -> loss shift O(1e-5).)
    ent = jnp.log(den) - jnp.sum(p * xs, axis=1, keepdims=True)   # (TB, 1)
    u = (1.0 + jnp.exp(-ent)) * row_valid.astype(jnp.float32)     # (TB, 1)

    # Partial per-class sums (batch reduction done as grouped VPU adds into the
    # (8, C) resident output blocks; 8->1 happens in the wrapper).
    wp = u * p                                               # (TB, C)
    groups = tb // _SUBLANE
    margin_ref[...] += jnp.sum(wp.reshape(groups, _SUBLANE, c), axis=0)
    diag_ref[...] += jnp.sum((wp * p).reshape(groups, _SUBLANE, c), axis=0)


def mcc_loss(logits: jax.Array, temperature: float, *,
             max_tile_rows: int | None = None, num_splits: int = 2) -> jax.Array:
    """Minimum Class Confusion loss.  logits: (B, C) f32 or bf16 -> scalar f32."""
    B, C = logits.shape
    elem_bytes = jnp.dtype(logits.dtype).itemsize
    c_phys = _round_up(C, _LANE)                 # physical lane footprint in VMEM

    # Tile rows: largest multiple of 8 whose tile fits a ~4 MiB VMEM budget
    # (amortizes per-grid-step overhead), capped by the (rounded-up) batch.
    tb = (4 << 20) // (c_phys * elem_bytes)
    tb = max(_SUBLANE, min(2048, (tb // _SUBLANE) * _SUBLANE))
    if max_tile_rows is not None:
        tb = min(tb, max(_SUBLANE, (max_tile_rows // _SUBLANE) * _SUBLANE))
    tb = min(tb, _round_up(B, _SUBLANE))

    num_tiles = _cdiv(B, tb)
    tiles_per_split = _cdiv(num_tiles, num_splits)

    kernel = functools.partial(
        _mcc_kernel,
        inv_temperature=1.0 / float(temperature),
        batch_size=B,
        tiles_per_split=tiles_per_split,
    )

    def logits_map(i, j):
        # Clamp so the (rare) fully out-of-range tile re-reads the last real
        # tile; the kernel's row mask zeroes its contribution.
        return (jnp.minimum(i * tiles_per_split + j, num_tiles - 1), 0)

    part_map = lambda i, j: (i, 0, 0)

    # Double-buffered input tiles + tiny partial-sum outputs + slack.
    tile_bytes = tb * c_phys * elem_bytes
    vmem_limit = int(min(max(4 * tile_bytes + (4 << 20), 16 << 20), 64 << 20))

    margin, diag = pl.pallas_call(
        kernel,
        out_shape=(
            jax.ShapeDtypeStruct((num_splits, _SUBLANE, C), jnp.float32),
            jax.ShapeDtypeStruct((num_splits, _SUBLANE, C), jnp.float32),
        ),
        grid_spec=pltpu.PrefetchScalarGridSpec(
            num_scalar_prefetch=0,
            grid=(num_splits, tiles_per_split),
            in_specs=[pl.BlockSpec((tb, C), logits_map)],
            out_specs=(
                pl.BlockSpec((None, _SUBLANE, C), part_map),
                pl.BlockSpec((None, _SUBLANE, C), part_map),
            ),
        ),
        compiler_params=pltpu.CompilerParams(
            dimension_semantics=("parallel", "arbitrary"),
            vmem_limit_bytes=vmem_limit),
    )(logits)

    # Tiny combine + finalize on length-C vectors (runs as plain JAX).
    # sum(ccm / rowsum-broadcast) == C exactly (ccm symmetric), so:
    margin = jnp.sum(margin, axis=(0, 1))        # (C,) row/col sums of ccm
    diag = jnp.sum(diag, axis=(0, 1))            # (C,) diagonal of ccm
    trace = jnp.sum(diag / margin)
    return (jnp.float32(C) - trace) / jnp.float32(C)


def _mcc_reference(logits, temperature):
    """Pure-JAX reference mirroring the PyTorch forward exactly (incl. eps)."""
    B, C = logits.shape
    preds = jax.nn.softmax(logits.astype(jnp.float32) / temperature, axis=1)
    ent = -jnp.sum(preds * jnp.log(preds + 1e-5), axis=1)
    w = 1.0 + jnp.exp(-ent)
    w = (B * w / jnp.sum(w))[:, None]
    ccm = (preds * w).T @ preds
    ccm = ccm / jnp.sum(ccm, axis=1)             # same broadcasting quirk as torch
    return (jnp.sum(ccm) - jnp.trace(ccm)) / C


if __name__ == "__main__":
    key = jax.random.PRNGKey(0)

    configs = [
        # (batch, classes, temperature, dtype, max_tile_rows)
        (8, 16, 2.0, jnp.float32, None),     # aligned single tile
        (10, 31, 2.5, jnp.float32, None),    # ragged batch + non-128 classes
        (37, 31, 1.0, jnp.float32, 8),       # multi-tile accumulation, odd tile count
        (64, 128, 2.0, jnp.bfloat16, 16),    # bf16 input streamed as-is
    ]

    for idx, (bs, nc, temp, dtype, mtr) in enumerate(configs):
        k = jax.random.fold_in(key, idx)
        logits = jax.random.normal(k, (bs, nc), dtype=jnp.float32).astype(dtype)

        loss = jax.block_until_ready(mcc_loss(logits, temp, max_tile_rows=mtr))
        ref = _mcc_reference(logits, temp)

        # Tolerance covers the documented O(1e-5) shift from dropping the +1e-5
        # eps inside the entropy log (logsumexp-form entropy).
        assert jnp.allclose(loss, ref, atol=5e-5, rtol=5e-5), \
            (bs, nc, float(loss), float(ref))

    print("KERNEL_OK")
</pallas_src>

<mosaic_0001>
module attributes {stable_mosaic.version = 11 : i64} {
  func.func @_mcc_kernel(%arg0: i32, %arg1: i32, %arg2: memref<8x16xf32, #tpu.memory_space<vmem>>, %arg3: memref<1x8x16xf32, #tpu.memory_space<vmem>>, %arg4: memref<1x8x16xf32, #tpu.memory_space<vmem>>) attributes {dimension_semantics = [#tpu.dimension_semantics<parallel>, #tpu.dimension_semantics<arbitrary>], iteration_bounds = array<i64: 2, 1>, scalar_prefetch = 0 : i64, scratch_operands = 0 : i64, tpu.core_type = #tpu.core_type<tc>, window_params = [{transform_indices = @transform_0, window_bounds = array<i64: 8, 16>}, {transform_indices = @transform_1, window_bounds = array<i64: 1, 8, 16>}, {transform_indices = @transform_2, window_bounds = array<i64: 1, 8, 16>}]} {
    %c0_i32 = arith.constant 0 : i32
    %0 = arith.cmpi eq, %arg1, %c0_i32 : i32
    %1 = arith.extui %0 : i1 to i32
    %c0_i32_0 = arith.constant 0 : i32
    %2 = arith.cmpi ne, %1, %c0_i32_0 : i32
    scf.if %2 {
      %cst_23 = arith.constant 0.000000e+00 : f32
      %60 = vector.broadcast %cst_23 : f32 to vector<8x16xf32>
      %c0_24 = arith.constant 0 : index
      %c0_25 = arith.constant 0 : index
      %c0_26 = arith.constant 0 : index
      %61 = vector.load %arg3[%c0_24, %c0_25, %c0_26] : memref<1x8x16xf32, #tpu.memory_space<vmem>>, vector<1x8x16xf32>
      %62 = vector.shape_cast %61 : vector<1x8x16xf32> to vector<8x16xf32>
      %63 = vector.shape_cast %60 : vector<8x16xf32> to vector<1x8x16xf32>
      tpu.vector_store %arg3[%c0_24, %c0_25, %c0_26], %63 {strides = array<i32>} : memref<1x8x16xf32, #tpu.memory_space<vmem>>, vector<1x8x16xf32>,
      %cst_27 = arith.constant 0.000000e+00 : f32
      %64 = vector.broadcast %cst_27 : f32 to vector<8x16xf32>
      %c0_28 = arith.constant 0 : index
      %c0_29 = arith.constant 0 : index
      %c0_30 = arith.constant 0 : index
      %65 = vector.load %arg4[%c0_28, %c0_29, %c0_30] : memref<1x8x16xf32, #tpu.memory_space<vmem>>, vector<1x8x16xf32>
      %66 = vector.shape_cast %65 : vector<1x8x16xf32> to vector<8x16xf32>
      %67 = vector.shape_cast %64 : vector<8x16xf32> to vector<1x8x16xf32>
      tpu.vector_store %arg4[%c0_28, %c0_29, %c0_30], %67 {strides = array<i32>} : memref<1x8x16xf32, #tpu.memory_space<vmem>>, vector<1x8x16xf32>,
    } else {
    }
    %c0 = arith.constant 0 : index
    %c0_1 = arith.constant 0 : index
    %3 = vector.load %arg2[%c0, %c0_1] : memref<8x16xf32, #tpu.memory_space<vmem>>, vector<8x16xf32>
    %c1_i32 = arith.constant 1 : i32
    %4 = arith.muli %arg0, %c1_i32 : i32
    %5 = arith.addi %4, %arg1 : i32
    %c8_i32 = arith.constant 8 : i32
    %6 = arith.muli %5, %c8_i32 : i32
    %7 = tpu.iota {dimensions = array<i32: 0>} : vector<8x1xi32>
    %8 = vector.broadcast %6 : i32 to vector<8x1xi32>
    %9 = arith.addi %8, %7 : vector<8x1xi32>
    %c8_i32_2 = arith.constant 8 : i32
    %10 = vector.broadcast %c8_i32_2 : i32 to vector<8x1xi32>
    %11 = arith.cmpi slt, %9, %10 : vector<8x1xi32>
    %cst = arith.constant 0.000000e+00 : f32
    %12 = vector.shape_cast %11 : vector<8x1xi1> to vector<8x1xi1>
    %13 = vector.broadcast %12 : vector<8x1xi1> to vector<8x16xi1>
    %14 = vector.broadcast %cst : f32 to vector<8x16xf32>
    %15 = arith.select %13, %3, %14 : vector<8x16xi1>, vector<8x16xf32>
    %cst_3 = arith.constant 5.000000e-01 : f32
    %16 = vector.broadcast %cst_3 : f32 to vector<8x16xf32>
    %17 = arith.mulf %15, %16 : vector<8x16xf32>
    %cst_4 = arith.constant dense<0xFF800000> : vector<8xf32>
    %18 = vector.multi_reduction <maximumf>, %17, %cst_4 [1] : vector<8x16xf32> to vector<8xf32>
    %19 = vector.shape_cast %18 : vector<8xf32> to vector<8x1xf32>
    %20 = vector.broadcast %19 : vector<8x1xf32> to vector<8x16xf32>
    %21 = arith.subf %17, %20 : vector<8x16xf32>
    %22 = math.exp %21 : vector<8x16xf32>
    %cst_5 = arith.constant dense<0.000000e+00> : vector<8xf32>
    %23 = vector.multi_reduction <add>, %22, %cst_5 [1] : vector<8x16xf32> to vector<8xf32>
    %24 = vector.shape_cast %23 : vector<8xf32> to vector<8x1xf32>
    %25 = tpu.reciprocal %24 : vector<8x1xf32> -> vector<8x1xf32>
    %26 = vector.broadcast %25 : vector<8x1xf32> to vector<8x16xf32>
    %27 = arith.mulf %22, %26 : vector<8x16xf32>
    %28 = math.log %24 : vector<8x1xf32>
    %29 = arith.mulf %27, %21 : vector<8x16xf32>
    %cst_6 = arith.constant dense<0.000000e+00> : vector<8xf32>
    %30 = vector.multi_reduction <add>, %29, %cst_6 [1] : vector<8x16xf32> to vector<8xf32>
    %31 = vector.shape_cast %30 : vector<8xf32> to vector<8x1xf32>
    %32 = arith.subf %28, %31 : vector<8x1xf32>
    %cst_7 = arith.constant 0.000000e+00 : f32
    %33 = vector.broadcast %cst_7 : f32 to vector<8x1xf32>
    %34 = arith.subf %33, %32 : vector<8x1xf32>
    %35 = math.exp %34 : vector<8x1xf32>
    %cst_8 = arith.constant 1.000000e+00 : f32
    %36 = vector.broadcast %cst_8 : f32 to vector<8x1xf32>
    %37 = arith.addf %36, %35 : vector<8x1xf32>
    %38 = arith.extui %11 : vector<8x1xi1> to vector<8x1xi32>
    %39 = arith.sitofp %38 : vector<8x1xi32> to vector<8x1xf32>
    %40 = arith.mulf %37, %39 : vector<8x1xf32>
    %41 = vector.broadcast %40 : vector<8x1xf32> to vector<8x16xf32>
    %42 = arith.mulf %41, %27 : vector<8x16xf32>
    %c0_9 = arith.constant 0 : index
    %c0_10 = arith.constant 0 : index
    %c0_11 = arith.constant 0 : index
    %43 = vector.load %arg3[%c0_9, %c0_10, %c0_11] : memref<1x8x16xf32, #tpu.memory_space<vmem>>, vector<1x8x16xf32>
    %44 = vector.shape_cast %43 : vector<1x8x16xf32> to vector<8x16xf32>
    %45 = vector.shape_cast %42 : vector<8x16xf32> to vector<1x8x16xf32>
    %cst_12 = arith.constant dense<0.000000e+00> : vector<8x16xf32>
    %46 = vector.multi_reduction <add>, %45, %cst_12 [0] : vector<1x8x16xf32> to vector<8x16xf32>
    %47 = arith.addf %44, %46 : vector<8x16xf32>
    %c0_13 = arith.constant 0 : index
    %c0_14 = arith.constant 0 : index
    %c0_15 = arith.constant 0 : index
    %48 = vector.load %arg3[%c0_13, %c0_14, %c0_15] : memref<1x8x16xf32, #tpu.memory_space<vmem>>, vector<1x8x16xf32>
    %49 = vector.shape_cast %48 : vector<1x8x16xf32> to vector<8x16xf32>
    %50 = vector.shape_cast %47 : vector<8x16xf32> to vector<1x8x16xf32>
    tpu.vector_store %arg3[%c0_13, %c0_14, %c0_15], %50 {strides = array<i32>} : memref<1x8x16xf32, #tpu.memory_space<vmem>>, vector<1x8x16xf32>,
    %c0_16 = arith.constant 0 : index
    %c0_17 = arith.constant 0 : index
    %c0_18 = arith.constant 0 : index
    %51 = vector.load %arg4[%c0_16, %c0_17, %c0_18] : memref<1x8x16xf32, #tpu.memory_space<vmem>>, vector<1x8x16xf32>
    %52 = vector.shape_cast %51 : vector<1x8x16xf32> to vector<8x16xf32>
    %53 = arith.mulf %42, %27 : vector<8x16xf32>
    %54 = vector.shape_cast %53 : vector<8x16xf32> to vector<1x8x16xf32>
    %cst_19 = arith.constant dense<0.000000e+00> : vector<8x16xf32>
    %55 = vector.multi_reduction <add>, %54, %cst_19 [0] : vector<1x8x16xf32> to vector<8x16xf32>
    %56 = arith.addf %52, %55 : vector<8x16xf32>
    %c0_20 = arith.constant 0 : index
    %c0_21 = arith.constant 0 : index
    %c0_22 = arith.constant 0 : index
    %57 = vector.load %arg4[%c0_20, %c0_21, %c0_22] : memref<1x8x16xf32, #tpu.memory_space<vmem>>, vector<1x8x16xf32>
    %58 = vector.shape_cast %57 : vector<1x8x16xf32> to vector<8x16xf32>
    %59 = vector.shape_cast %56 : vector<8x16xf32> to vector<1x8x16xf32>
    tpu.vector_store %arg4[%c0_20, %c0_21, %c0_22], %59 {strides = array<i32>} : memref<1x8x16xf32, #tpu.memory_space<vmem>>, vector<1x8x16xf32>,
    return
  }
  func.func @transform_0(%arg0: i32, %arg1: i32) -> (i32, i32) {
    %c1_i32 = arith.constant 1 : i32
    %0 = arith.muli %arg0, %c1_i32 : i32
    %1 = arith.addi %0, %arg1 : i32
    %c0_i32 = arith.constant 0 : i32
    %2 = arith.minsi %1, %c0_i32 : i32
    %c0_i32_0 = arith.constant 0 : i32
    %c0_i32_1 = arith.constant 0 : i32
    return %2, %c0_i32_0 : i32, i32
  }
  func.func @transform_1(%arg0: i32, %arg1: i32) -> (i32, i32, i32) {
    %c0_i32 = arith.constant 0 : i32
    %c0_i32_0 = arith.constant 0 : i32
    %c0_i32_1 = arith.constant 0 : i32
    return %arg0, %c0_i32, %c0_i32_0 : i32, i32, i32
  }
  func.func @transform_2(%arg0: i32, %arg1: i32) -> (i32, i32, i32) {
    %c0_i32 = arith.constant 0 : i32
    %c0_i32_0 = arith.constant 0 : i32
    %c0_i32_1 = arith.constant 0 : i32
    return %arg0, %c0_i32, %c0_i32_0 : i32, i32, i32
  }
}

</mosaic_0001>

<bundles_post_ra>
// kernel: tpu_custom_call.1
= control target key start
LH: loop header
LB: loop body
LE: loop exit
PB: predicated region body
PF: predicated region fallthrough
CT: control target
= control target key end

     0   :  { %8 = vsyncpa [#allocation3], 0  ;;  %s897_s0 = inlined_call_operand.hbm [shape: f32[8,16], index: 0, kind: input, shape index: {}]   ;;  %s898_s1 = inlined_call_operand.hbm [shape: f32[2,8,16], index: 1, kind: output, shape index: {0}]   ;;  %s899_s2 = inlined_call_operand.hbm [shape: f32[2,8,16], index: 2, kind: output, shape index: {1}]  }
   0x1   :  { %10 = vsyncpa [#allocation3 + $0x1], 0 }
   0x2   :  { %11 = vsyncpa [#allocation4], 0 }
   0x3   :  { %13 = vsyncpa [#allocation4 + $0x1], 0 }
   0x4   :  { %14 = vsyncpa [#allocation7], 0 }
   0x5   :  { %16 = vsyncpa [#allocation7 + $0x1], 0  ;;  %s688_s9 = smov 0   ;;  %s690_s10 = smov 0  }
   0x6   :  { %s692_s11 = smov 0   ;;  %s694_s12 = smov 0  }
   0x7   :  { %s696_s13 = smov 0   ;;  %s698_s14 = smov 0  }
   0x8   :  { %s700_s15 = smov 0   ;;  %s702_s16 = smov 0  }
   0x9 LB: > { %s390_s17 = sadd.s32 4294967295, %s667_s16   ;;  %s391_s18 = sadd.s32 4294967294, %s667_s16   ;;  %s667_s16 = sphi %s702_s16, %s22_s16   ;;  %s663_s15 = sphi %s700_s15, %s918_s15   ;;  %s659_s14 = sphi %s698_s14, %s917_s14   ;;  %s655_s13 = sphi %s696_s13, %s887_s13   ;;  %s651_s12 = sphi %s694_s12, %s916_s12   ;;  %s647_s11 = sphi %s692_s11, %s915_s11   ;;  %s643_s10 = sphi %s690_s10, %s914_s10   ;;  %s639_s9 = sphi %s688_s9, %s913_s9  }
   0xa   : > { %s34_s19 = sadd.s32 1, %s663_s15  ;;  %p636_p1 = scmp.ne.s32.totalorder %s655_s13, 0 }
   0xb   : > { %p36_p0 = scmp.ge.s32.totalorder %s34_s19, 2  ;;  %p55_p2 = scmp.eq.s32.totalorder %s667_s16, 0 }
   0xc   : > { %p60_p3 = scmp.ne.s32.totalorder %s655_s13, %s651_s12  ;;  %p61_p5 = scmp.eq.s32.totalorder %s390_s17, 0 }
   0xd   : > { %s920_s19 = smov (%p36_p0, %s34_s19), 0  ;;  %p734_p4 = por %p636_p1, %p55_p2 }
   0xe   : > { %p738_p6 = por %p61_p5, %p60_p3  ;;  %s70_s22 = ssub.s32 %s663_s15, %s920_s19 }
   0xf   : > { %p71_p7 = scmp.eq.s32.totalorder %s70_s22, 0  ;;  %s73_s23 = sadd.s32 1, %s647_s11 }
  0x10   : > { %s903_s21 = scalar_select %p738_p6, 1, 0 }
  0x11   : > { %s746_s24 = scalar_select %p71_p7, %s647_s11, %s73_s23  }
  0x12   : > { %p83_p8 = scmp.ne.s32.totalorder %s647_s11, %s643_s10  ;;  %p84_p9 = scmp.eq.s32.totalorder %s390_s17, 1 }
  0x13   : > { %p89_p10 = scmp.ne.s32.totalorder %s643_s10, %s639_s9  ;;  %p90_p11 = scmp.eq.s32.totalorder %s391_s18, 1 }
  0x14   : > { %p752_p12 = por %p84_p9, %p83_p8  ;;  %p425_p1 = scmp.lt.s32.totalorder %s667_s16, 2 }
  0x15   : > { %p757_p0 = por %p90_p11, %p89_p10  ;;  %s669_s27 = smov [#allocation2]  }
  0x16   : > { %s904_s25 = scalar_select %p752_p12, 1, 0 }
  0x17   : > { %s905_s26 = scalar_select %p757_p0, 1, 0 }
  0x18   : > { %s150_s28 = sshll.u32 %s669_s27, 4  ;;  %p764_p2 = pnand %p425_p1, %p734_p4  ;;  %s151_s28 = int_to_ptr.vmem [resolvable:$true] %s150_s28 }
  0x19   : > { %s508_s4 = scalar_lea.hbm %s897_s0, 128 }
  0x1a   : > { %p509_p7 = scmp.ne.s32.totalorder %s897_s0, %s508_s4  ;;  %p510_p8 = pneg %p764_p2 }
  0x1b   : > { %p515_p4 = scmp.lt.s32.totalorder %s508_s4, %s508_s4 }
  0x1c   : > { %p511_p9 = pnand %p510_p8, %p509_p7 }
  0x1e   : > { %p512_p10 = pneg %p511_p9 }
  0x20   : > { %p517_p11 = pnand %p515_p4, %p512_p10 }
  0x22   : > { %520 = shalt.err (!%p517_p11)
}
  0x23   : > { %s521_s7 = scalar_lea.vmem %s151_s28, 128  ;;  %s528_s8 = scalar_lea.vmem %s151_s28, 256 }
  0x24   : > { %p522_p1 = scmp.ne.s32.totalorder %s151_s28, %s521_s7  ;;  %p529_p5 = scmp.lt.s32.totalorder %s151_s28, %s151_s28 }
  0x25   : > { %p530_p0 = scmp.lt.s32.totalorder %s528_s8, %s521_s7 }
  0x26   : > { %p524_p13 = pnand %p522_p1, %p510_p8 }
  0x27   : > { %p531_p12 = por %p530_p0, %p529_p5 }
  0x28   : > { %p525_p3 = pneg %p524_p13 }
  0x2a   : > { %p532_p6 = pnand %p531_p12, %p525_p3 }
  0x2c   : > { %535 = shalt.err (!%p532_p6)
}
  0x2d   : > { %417 = dma.hbm_to_vmem [thread:$0]  (!%p764_p2), %s897_s0, 128, %s151_s28, [#allocation3]  }
  0x2e   : > { %p907_p7 = scmp.lt.s32.totalorder %s667_s16, 3  ;;  %p908_p9 = scmp.ge.s32.totalorder %s667_s16, 1 }
  0x30   : > { %p156_p10 = pnand %p908_p9, %p907_p7 }
  0x31   : > { %s161_s18 = sand.u32 (!%p156_p10), 1, %s655_s13   ;;  %p909_p12 = scmp.ne.s32.totalorder (!%p156_p10), %s903_s21, 0 }
  0x32   : > { %159 = sbr.rel (%p156_p10) target bundleno = 582 (0x246), region = 24  ;;  %s397_s20 = sshll.u32 (!%p156_p10), %s161_s18, 3 }
  0x33   : > { %s162_s22 = scalar_lea.sflag (!%p156_p10), [#allocation3], %s161_s18  ;;  %s165_s23 = scalar_lea.vmem (!%p156_p10), [#allocation2], %s397_s20 }
  0x37   : > { %625 = dma.done.wait (%p909_p12), %s162_s22, 128  }
  0x38   : > { %627 = vsyncadd (%p909_p12), %s162_s22, 4294967168  ;;  %s400_s27 = sshll.u32 %s659_s14, 3  ;;  %v204_v0 = vlaneseq  ;;  %v201_v4 = vld [vmem:[%s165_s23] sm:$0xff]  ;;  %vm198_vm1 = vcmask 130048   ;;  %s798_s21 = sand.u32 1, %s643_s10   ;;  %v670_v18 = vmov 0.0  }
  0x39   : > { %v206_v1 = vstv %s400_s27  ;;  %s398_s28 = sshll.u32 %s798_s21, 3  ;;  %s404_s3 = sshll.u32 %s659_s14, 7 }
  0x3a   : > { %v205_v2 = vshrl.u32 %v204_v0, 7  ;;  %s183_s29 = scalar_lea.vmem [#allocation5], %s398_s28  ;;  %s802_s30 = scalar_lea.vmem [#allocation6], %s398_s28 }
  0x3b   : > { %199 = vst.msk [vmem:[%s183_s29] sm:$0xff] %vm198_vm1, %v670_v18  ;;  %200 = vst.msk [vmem:[%s802_s30] sm:$0xff] %vm198_vm1, %v670_v18  ;;  %s267_s4 = sshll.u32 %s183_s29, 4  ;;  %s280_s5 = sshll.u32 %s802_s30, 4  ;;  %s815_s4 = int_to_ptr.vmem [resolvable:$true] %s267_s4  ;;  %s823_s5 = int_to_ptr.vmem [resolvable:$true] %s280_s5 }
  0x3c   : > { %v207_v3 = vadd.s32 %v206_v1, %v205_v2  ;;  %s813_s8 = scalar_lea.hbm %s898_s1, %s404_s3  ;;  %s821_s17 = scalar_lea.hbm %s899_s2, %s404_s3 }
  0x3d   : > { %s249_s18 = scalar_lea.sflag [#allocation4], %s798_s21  ;;  %s536_s20 = scalar_lea.vmem %s815_s4, 128 }
  0x3e   : > { %vm208_vm0 = vcmp.lt.s32.totalorder %v207_v3, 8  ;;  %p537_p6 = scmp.ne.s32.totalorder %s815_s4, %s536_s20  ;;  %p910_p13 = scmp.ne.s32.totalorder %s904_s25, 0 }
  0x3f   : > { %v211_v5 = vsel %vm208_vm0, %v201_v4, 0.0  ;;  %v401_v26 = vsel %vm208_vm0, 1.0, %v670_v18  ;;  %s671_s22 = smov [#allocation5]  }
  0x40   : > { %v212_v6 = vmul.f32 0.5, %v211_v5  ;;  %p538_p0 = pnand %p537_p6, %p910_p13  ;;  %s540_s23 = sshll.u32 %s671_s22, 4  ;;  %s541_s23 = int_to_ptr.vmem [resolvable:$false] %s540_s23 }
  0x41   : > { %s542_s27 = scalar_lea.vmem %s541_s23, 256  ;;  %p543_p3 = scmp.lt.s32.totalorder %s815_s4, %s541_s23 }
  0x42   : > { %v214_v7 = vsel %vm198_vm1, %v212_v6, -inf  ;;  %v239_v29 = vld [vmem:[%s183_s29] sm:$0xff]  ;;  %v243_v31 = vld [vmem:[%s802_s30] sm:$0xff]  ;;  %p539_p2 = pneg %p538_p0  ;;  %p544_p5 = scmp.lt.s32.totalorder %s542_s27, %s536_s20 }
  0x43   : > { %215 = vmax.xlane.f32.xlu0 %v214_v7 }
  0x44   : > { %p545_p8 = por %p544_p5, %p543_p3 }
  0x46   : > { %p546_p4 = pnand %p545_p8, %p539_p2 }
  0xcc   : > { %v216_v8 = vpop.xlane.xlu0 %215 }
  0xcd   : > { %v217_v9 = vsub.f32 %v212_v6, %v216_v8 }
  0xcf   : > { %v218_v10 = vmul.f32 1.442695, %v217_v9 }
  0xd1   : > { %500 = vpow2.f32 %v218_v10 }
  0xde   : > { %v501_v11 = vpop.eup %500 }
  0xdf   : > { %v220_v12 = vsel %vm198_vm1, %v501_v11, 0.0 }
  0xe0   : > { %221 = vadd.xlane.f32.xlu0 %v220_v12 }
 0x169   : > { %v222_v13 = vpop.xlane.xlu0 %221 }
 0x16a   : > { %502 = vrcp.f32 %v222_v13 }
 0x16b   : > { %504 = vlog2.f32 %v222_v13 }
 0x177   : > { %v503_v14 = vpop.eup %502 }
 0x178   : > { %v224_v15 = vmul.f32 %v503_v14, %v501_v11  ;;  %v505_v19 = vpop.eup %504 }
 0x179   : > { %v226_v20 = vmul.f32 0.6931472, %v505_v19 }
 0x17a   : > { %v227_v16 = vmul.f32 %v224_v15, %v217_v9 }
 0x17c   : > { %v228_v17 = vsel %vm198_vm1, %v227_v16, 0.0 }
 0x17d   : > { %229 = vadd.xlane.f32.xlu1 %v228_v17 }
 0x206   : > { %v230_v21 = vpop.xlane.xlu1 %229 }
 0x207   : > { %v231_v22 = vsub.f32 %v226_v20, %v230_v21 }
 0x209   : > { %v232_v23 = vsub.f32 0.0, %v231_v22 }
 0x20b   : > { %v233_v24 = vmul.f32 1.442695, %v232_v23 }
 0x20d   : > { %506 = vpow2.f32 %v233_v24 }
 0x21a   : > { %v507_v25 = vpop.eup %506 }
 0x21b   : > { %v235_v27 = vadd.f32 1.0, %v507_v25 }
 0x21d   : > { %v237_v28 = vmul.f32 %v401_v26, %v235_v27 }
 0x21f   : > { %v238_v30 = vmul.f32 %v237_v28, %v224_v15 }
 0x221   : > { %v244_v32 = vmul.f32 %v238_v30, %v224_v15  ;;  %v241_v33 = vadd.f32 %v239_v29, %v238_v30 }
 0x223   : > { %242 = vst.msk [vmem:[%s183_s29] sm:$0xff] %vm198_vm1, %v241_v33  ;;  %v246_v34 = vadd.f32 %v244_v32, %v243_v31 }
 0x224   : > { %549 = shalt.err (!%p546_p4)
}
 0x225   : > { %s550_s28 = scalar_lea.hbm %s813_s8, 128  ;;  %s554_s6 = scalar_lea.hbm %s898_s1, 256 }
 0x226   : > { %p551_p11 = scmp.ne.s32.totalorder %s813_s8, %s550_s28  ;;  %p555_p9 = scmp.lt.s32.totalorder %s813_s8, %s898_s1 }
 0x227   : > { %p556_p10 = scmp.lt.s32.totalorder %s554_s6, %s550_s28 }
 0x228   : > { %p552_p1 = pnand %p551_p11, %p910_p13 }
 0x229   : > { %p557_p12 = por %p556_p10, %p555_p9 }
 0x22a   : > { %p553_p7 = pneg %p552_p1 }
 0x22c   : > { %p558_p6 = pnand %p557_p12, %p553_p7 }
 0x22e   : > { %561 = shalt.err (!%p558_p6)
}
 0x22f   : > { %410 = dma.vmem_to_hbm [thread:$0]  (%p910_p13), %s815_s4, 128, %s813_s8, %s249_s18   ;;  %247 = vst.msk [vmem:[%s802_s30] sm:$0xff] %vm198_vm1, %v246_v34 }
 0x230   : > { %s254_s12 = scalar_lea.sflag [#allocation7], %s798_s21  ;;  %s562_s20 = scalar_lea.vmem %s823_s5, 128 }
 0x231   : > { %p563_p0 = scmp.ne.s32.totalorder %s823_s5, %s562_s20  ;;  %s672_s22 = smov [#allocation6]  }
 0x232   : > { %s566_s23 = sshll.u32 %s672_s22, 4  ;;  %s567_s23 = int_to_ptr.vmem [resolvable:$false] %s566_s23 }
 0x233   : > { %p564_p2 = pnand %p563_p0, %p910_p13  ;;  %s568_s27 = scalar_lea.vmem %s567_s23, 256 }
 0x234   : > { %p569_p5 = scmp.lt.s32.totalorder %s823_s5, %s567_s23  ;;  %p570_p8 = scmp.lt.s32.totalorder %s568_s27, %s562_s20 }
 0x235   : > { %p565_p3 = pneg %p564_p2 }
 0x236   : > { %p571_p4 = por %p570_p8, %p569_p5 }
 0x238   : > { %p572_p11 = pnand %p571_p4, %p565_p3 }
 0x23a   : > { %575 = shalt.err (!%p572_p11)
}
 0x23b   : > { %s576_s30 = scalar_lea.hbm %s821_s17, 128  ;;  %s580_s8 = scalar_lea.hbm %s899_s2, 256 }
 0x23c   : > { %p577_p1 = scmp.ne.s32.totalorder %s821_s17, %s576_s30  ;;  %p581_p10 = scmp.lt.s32.totalorder %s821_s17, %s899_s2 }
 0x23d   : > { %p582_p12 = scmp.lt.s32.totalorder %s580_s8, %s576_s30 }
 0x23e   : > { %p578_p7 = pnand %p577_p1, %p910_p13 }
 0x23f   : > { %p583_p6 = por %p582_p12, %p581_p10 }
 0x240   : > { %p579_p9 = pneg %p578_p7 }
 0x242   : > { %p584_p0 = pnand %p583_p6, %p579_p9 }
 0x244   : > { %587 = shalt.err (!%p584_p0)
}
 0x245   : > { %411 = dma.vmem_to_hbm [thread:$0]  (%p910_p13), %s823_s5, 128, %s821_s17, %s254_s12  }
 0x246 PF: > { %s292_s29 = sand.u32 1, %s639_s9   ;;  %p911_p2 = scmp.ne.s32.totalorder %s905_s26, 0 }
 0x247   : > { %p912_p3 = scmp.ge.s32.totalorder %s667_s16, 2  ;;  %s293_s3 = scalar_lea.sflag [#allocation4], %s292_s29 }
 0x249   : > { %p419_p5 = pnand %p912_p3, %p911_p2 }
 0x24b   : > { %p420_p8 = pneg %p419_p5 }
 0x24d   : > { %629 = dma.done.wait (%p420_p8), %s293_s3, 128  }
 0x24e   : > { %631 = vsyncadd (%p420_p8), %s293_s3, 4294967168  ;;  %s302_s6 = scalar_lea.sflag [#allocation7], %s292_s29 }
 0x24f   : > { %633 = dma.done.wait (%p420_p8), %s302_s6, 128  }
 0x250   : > { %635 = vsyncadd (%p420_p8), %s302_s6, 4294967168  ;;  %s22_s16 = sadd.s32 1, %s667_s16   ;;  %s913_s9 = smov %s643_s10 }
 0x251   : > { %p19_p4 = scmp.ge.s32.totalorder %s22_s16, 4   ;;  %s914_s10 = smov %s647_s11 }
 0x252   : > { %s915_s11 = smov %s746_s24  ;;  %s916_s12 = smov %s655_s13 }
 0x253   : > { %s887_s13 = smov 0   ;;  %s917_s14 = smov %s663_s15 }
 0x254   : > { %s918_s15 = smov %s920_s19  ;;  %21 = sbr.rel (!%p19_p4) target bundleno = 9 (0x9), region = 90 }
 0x259   :  { %307 = vsyncpa [#allocation3], 1 }
 0x25a   :  { %309 = vsyncpa [#allocation3 + $0x1], 1 }
 0x25b   :  { %310 = vsyncpa [#allocation4], 1 }
 0x25c   :  { %312 = vsyncpa [#allocation4 + $0x1], 1 }
 0x25d   :  { %313 = vsyncpa [#allocation7], 1 }
 0x25e   :  { %315 = vsyncpa [#allocation7 + $0x1], 1 }

</bundles_post_ra>
